<compile_context>
chip_gen: v5e
topology: v5e:2x2
jax: 0.10.0
libtpu: 0.0.40
codegen_flags: <defaults>
</compile_context>

<pallas_src>
import jax
import jax.numpy as jnp
from jax.experimental import pallas as pl
from jax.experimental.pallas import tpu as pltpu

_LN_EPS = 1e-5


def _emb_ln_kernel(words_ref, pos_ref, tids_ref, tok_ref, gamma_ref, beta_ref,
                   out_ref):
    # words_ref, pos_ref : (1, T, H) streamed blocks (native dtype)
    # tids_ref           : (1, T, 1) int32 token-type ids
    # tok_ref            : (n_types, H) f32, VMEM-resident
    # gamma_ref, beta_ref: (1, H) f32, VMEM-resident
    x = words_ref[...].astype(jnp.float32) + pos_ref[...].astype(jnp.float32)

    # Token-type embedding: select among the (tiny, static) table rows.
    tids = tids_ref[...]                                   # (1, T, 1) int32
    n_types = tok_ref.shape[0]
    tok = tok_ref[0, :][None, None, :]                     # (1, 1, H)
    for t in range(1, n_types):                            # static unroll (n_types ~ 2)
        tok = jnp.where(tids == t, tok_ref[t, :][None, None, :], tok)
    x = x + tok

    # LayerNorm over hidden dim (f32 stats), rsqrt on the EUP.
    inv_h = 1.0 / x.shape[-1]
    mean = jnp.sum(x, axis=-1, keepdims=True) * inv_h
    xc = x - mean
    var = jnp.sum(xc * xc, axis=-1, keepdims=True) * inv_h
    y = xc * jax.lax.rsqrt(var + _LN_EPS)
    y = y * gamma_ref[...] + beta_ref[...]

    out_ref[...] = y.astype(out_ref.dtype)


def _round_up(x, m):
    return ((x + m - 1) // m) * m


def _pad_seq(x, s_pad, axis=1):
    pad = s_pad - x.shape[axis]
    if pad == 0:
        return x
    cfg = [(0, 0)] * x.ndim
    cfg[axis] = (0, pad)
    return jnp.pad(x, cfg)


def bert_embeddings(vis_feats, input_ids, word_table, pos_table, tok_table,
                    ln_gamma, ln_beta, token_type_ids=None, position_ids=None,
                    vis_input=True, len_vis_input=49):
    """Fused BertEmbeddings forward.

    vis_feats: (B, len_vis_input, H); input_ids: (B, S) int;
    word_table: (V, H); pos_table: (P, H); tok_table: (n_types, H);
    ln_gamma/ln_beta: (H,).  Returns (B, S, H) in word_table.dtype.
    """
    B, S = input_ids.shape
    V, H = word_table.shape
    if token_type_ids is None:
        token_type_ids = jnp.zeros((B, S), dtype=jnp.int32)
    ids = input_ids.astype(jnp.int32)

    # ---- word + visual-feature rows: ONE gather over a combined table ----
    use_vis = bool(vis_input) and int(len_vis_input) != 0
    if use_vis:
        L = int(len_vis_input)
        vis_flat = vis_feats.reshape(B * L, H).astype(word_table.dtype)
        combined = jnp.concatenate([word_table, vis_flat], axis=0)
        s_idx = jnp.arange(S, dtype=jnp.int32)[None, :]
        b_idx = jnp.arange(B, dtype=jnp.int32)[:, None]
        inside = (s_idx >= 1) & (s_idx <= L)                 # vis slots 1..L
        gidx = jnp.where(inside, V + b_idx * L + (s_idx - 1), ids)
    else:
        combined, gidx = word_table, ids
    words = jnp.take(combined, gidx, axis=0)                 # (B, S, H)

    # ---- positions: contiguous slab for the default arange path ----
    if position_ids is None:
        pos_arr = pos_table[:S][None]                        # (1, S, H)
    else:
        pos_arr = jnp.take(pos_table, position_ids.astype(jnp.int32), axis=0)

    # ---- token tiling ----
    if S >= 256:
        t_tile = 256
    elif S >= 128:
        t_tile = 128
    else:
        t_tile = _round_up(max(S, 1), 8)
    s_pad = _round_up(S, t_tile)
    n_s = s_pad // t_tile

    words = _pad_seq(words, s_pad)
    pos_arr = _pad_seq(pos_arr, s_pad)
    tids = _pad_seq(token_type_ids.astype(jnp.int32)[..., None], s_pad)  # (B,S_pad,1)

    tok_f32 = tok_table.astype(jnp.float32)                  # tiny, VMEM-resident
    gamma2d = ln_gamma.astype(jnp.float32).reshape(1, H)
    beta2d = ln_beta.astype(jnp.float32).reshape(1, H)
    out_dtype = word_table.dtype

    if pos_arr.shape[0] == B:
        pos_index_map = lambda b, s: (b, s, 0)
    else:
        pos_index_map = lambda b, s: (0, s, 0)

    out_padded = pl.pallas_call(
        _emb_ln_kernel,
        out_shape=jax.ShapeDtypeStruct((B, s_pad, H), out_dtype),
        grid=(B, n_s),
        in_specs=[
            pl.BlockSpec((1, t_tile, H), lambda b, s: (b, s, 0)),   # words(+vis)
            pl.BlockSpec((1, t_tile, H), pos_index_map),            # positions
            pl.BlockSpec((1, t_tile, 1), lambda b, s: (b, s, 0)),   # token-type ids
            pl.BlockSpec(tok_f32.shape, lambda b, s: (0, 0)),       # token-type table
            pl.BlockSpec((1, H), lambda b, s: (0, 0)),              # gamma
            pl.BlockSpec((1, H), lambda b, s: (0, 0)),              # beta
        ],
        out_specs=pl.BlockSpec((1, t_tile, H), lambda b, s: (b, s, 0)),
        compiler_params=pltpu.CompilerParams(
            dimension_semantics=("parallel", "parallel")),
    )(words, pos_arr, tids, tok_f32, gamma2d, beta2d)

    # TODO(synk): dropout is eval-mode identity (no RNG mask); the
    # fp32_embedding=True ".half()" cast path is not implemented (config-off default).
    return out_padded[:, :S, :]


if __name__ == "__main__":
    key = jax.random.PRNGKey(0)
    B, S, H = 2, 8, 32          # small shapes: batch=2, seq=8, hidden=32
    V, P, NT, L = 32, 16, 2, 3  # vocab, max positions, type vocab, len_vis_input

    ks = jax.random.split(key, 7)
    word_table = 0.02 * jax.random.normal(ks[0], (V, H), dtype=jnp.float32)
    pos_table = 0.02 * jax.random.normal(ks[1], (P, H), dtype=jnp.float32)
    tok_table = 0.02 * jax.random.normal(ks[2], (NT, H), dtype=jnp.float32)
    ln_gamma = 1.0 + 0.1 * jax.random.normal(ks[3], (H,), dtype=jnp.float32)
    ln_beta = 0.1 * jax.random.normal(ks[4], (H,), dtype=jnp.float32)
    input_ids = jax.random.randint(ks[5], (B, S), 0, V, dtype=jnp.int32)
    vis_feats = jax.random.normal(ks[6], (B, L, H), dtype=jnp.float32)
    token_type_ids = jnp.concatenate(
        [jnp.zeros((B, S // 2), jnp.int32), jnp.ones((B, S - S // 2), jnp.int32)],
        axis=1)

    out = bert_embeddings(vis_feats, input_ids, word_table, pos_table, tok_table,
                          ln_gamma, ln_beta, token_type_ids=token_type_ids,
                          vis_input=True, len_vis_input=L)
    out = jax.block_until_ready(out)

    # Pure-JAX reference mirroring the PyTorch forward.
    words = word_table[input_ids]
    words = jnp.concatenate([words[:, :1], vis_feats, words[:, L + 1:]], axis=1)
    pos = pos_table[jnp.arange(S)][None, :, :]
    tok = tok_table[token_type_ids]
    x = words + pos + tok
    u = x.mean(-1, keepdims=True)
    v = ((x - u) ** 2).mean(-1, keepdims=True)
    ref = ln_gamma * (x - u) / jnp.sqrt(v + _LN_EPS) + ln_beta

    assert out.shape == (B, S, H)
    err = float(jnp.max(jnp.abs(out - ref)))
    assert err < 1e-4, err
    print("KERNEL_OK")
</pallas_src>

<mosaic_0001>
module attributes {stable_mosaic.version = 11 : i64} {
  func.func @_emb_ln_kernel(%arg0: i32, %arg1: i32, %arg2: memref<1x8x32xf32, #tpu.memory_space<vmem>>, %arg3: memref<1x8x32xf32, #tpu.memory_space<vmem>>, %arg4: memref<1x8x1xi32, #tpu.memory_space<vmem>>, %arg5: memref<2x32xf32, #tpu.memory_space<vmem>>, %arg6: memref<1x32xf32, #tpu.memory_space<vmem>>, %arg7: memref<1x32xf32, #tpu.memory_space<vmem>>, %arg8: memref<1x8x32xf32, #tpu.memory_space<vmem>>) attributes {dimension_semantics = [#tpu.dimension_semantics<parallel>, #tpu.dimension_semantics<parallel>], iteration_bounds = array<i64: 2, 1>, scalar_prefetch = 0 : i64, scratch_operands = 0 : i64, tpu.core_type = #tpu.core_type<tc>, window_params = [{transform_indices = @transform_0, window_bounds = array<i64: 1, 8, 32>}, {transform_indices = @transform_1, window_bounds = array<i64: 1, 8, 32>}, {transform_indices = @transform_2, window_bounds = array<i64: 1, 8, 1>}, {pipeline_mode = #tpu.pipeline_mode<synchronous>, transform_indices = @transform_3, window_bounds = array<i64: 2, 32>}, {pipeline_mode = #tpu.pipeline_mode<synchronous>, transform_indices = @transform_4, window_bounds = array<i64: 1, 32>}, {pipeline_mode = #tpu.pipeline_mode<synchronous>, transform_indices = @transform_5, window_bounds = array<i64: 1, 32>}, {transform_indices = @transform_6, window_bounds = array<i64: 1, 8, 32>}]} {
    %c0 = arith.constant 0 : index
    %c0_0 = arith.constant 0 : index
    %c0_1 = arith.constant 0 : index
    %0 = vector.load %arg2[%c0, %c0_0, %c0_1] : memref<1x8x32xf32, #tpu.memory_space<vmem>>, vector<1x8x32xf32>
    %c0_2 = arith.constant 0 : index
    %c0_3 = arith.constant 0 : index
    %c0_4 = arith.constant 0 : index
    %1 = vector.load %arg3[%c0_2, %c0_3, %c0_4] : memref<1x8x32xf32, #tpu.memory_space<vmem>>, vector<1x8x32xf32>
    %2 = arith.addf %0, %1 : vector<1x8x32xf32>
    %c0_5 = arith.constant 0 : index
    %c0_6 = arith.constant 0 : index
    %c0_7 = arith.constant 0 : index
    %3 = vector.load %arg4[%c0_5, %c0_6, %c0_7] : memref<1x8x1xi32, #tpu.memory_space<vmem>>, vector<1x8x1xi32>
    %c0_8 = arith.constant 0 : index
    %c0_9 = arith.constant 0 : index
    %4 = vector.load %arg5[%c0_8, %c0_9] : memref<2x32xf32, #tpu.memory_space<vmem>>, vector<1x32xf32>
    %5 = vector.shape_cast %4 : vector<1x32xf32> to vector<32xf32>
    %6 = vector.shape_cast %5 : vector<32xf32> to vector<1x1x32xf32>
    %c1_i32 = arith.constant 1 : i32
    %7 = vector.broadcast %c1_i32 : i32 to vector<1x8x1xi32>
    %8 = arith.cmpi eq, %3, %7 : vector<1x8x1xi32>
    %c1 = arith.constant 1 : index
    %c0_10 = arith.constant 0 : index
    %9 = vector.load %arg5[%c1, %c0_10] : memref<2x32xf32, #tpu.memory_space<vmem>>, vector<1x32xf32>
    %10 = vector.shape_cast %9 : vector<1x32xf32> to vector<32xf32>
    %11 = vector.shape_cast %10 : vector<32xf32> to vector<1x1x32xf32>
    %12 = vector.shape_cast %8 : vector<1x8x1xi1> to vector<1x8x1xi1>
    %13 = vector.broadcast %12 : vector<1x8x1xi1> to vector<1x8x32xi1>
    %14 = vector.shape_cast %11 : vector<1x1x32xf32> to vector<1x1x32xf32>
    %15 = vector.broadcast %14 : vector<1x1x32xf32> to vector<1x8x32xf32>
    %16 = vector.shape_cast %6 : vector<1x1x32xf32> to vector<1x1x32xf32>
    %17 = vector.broadcast %16 : vector<1x1x32xf32> to vector<1x8x32xf32>
    %18 = arith.select %13, %15, %17 : vector<1x8x32xi1>, vector<1x8x32xf32>
    %19 = arith.addf %2, %18 : vector<1x8x32xf32>
    %cst = arith.constant dense<0.000000e+00> : vector<1x8xf32>
    %20 = vector.multi_reduction <add>, %19, %cst [2] : vector<1x8x32xf32> to vector<1x8xf32>
    %21 = vector.shape_cast %20 : vector<1x8xf32> to vector<1x8x1xf32>
    %cst_11 = arith.constant 3.125000e-02 : f32
    %22 = vector.broadcast %cst_11 : f32 to vector<1x8x1xf32>
    %23 = arith.mulf %21, %22 : vector<1x8x1xf32>
    %24 = vector.broadcast %23 : vector<1x8x1xf32> to vector<1x8x32xf32>
    %25 = arith.subf %19, %24 : vector<1x8x32xf32>
    %26 = arith.mulf %25, %25 : vector<1x8x32xf32>
    %cst_12 = arith.constant dense<0.000000e+00> : vector<1x8xf32>
    %27 = vector.multi_reduction <add>, %26, %cst_12 [2] : vector<1x8x32xf32> to vector<1x8xf32>
    %28 = vector.shape_cast %27 : vector<1x8xf32> to vector<1x8x1xf32>
    %cst_13 = arith.constant 3.125000e-02 : f32
    %29 = vector.broadcast %cst_13 : f32 to vector<1x8x1xf32>
    %30 = arith.mulf %28, %29 : vector<1x8x1xf32>
    %cst_14 = arith.constant 9.99999974E-6 : f32
    %31 = vector.broadcast %cst_14 : f32 to vector<1x8x1xf32>
    %32 = arith.addf %30, %31 : vector<1x8x1xf32>
    %33 = math.rsqrt %32 : vector<1x8x1xf32>
    %34 = vector.broadcast %33 : vector<1x8x1xf32> to vector<1x8x32xf32>
    %35 = arith.mulf %25, %34 : vector<1x8x32xf32>
    %c0_15 = arith.constant 0 : index
    %c0_16 = arith.constant 0 : index
    %36 = vector.load %arg6[%c0_15, %c0_16] : memref<1x32xf32, #tpu.memory_space<vmem>>, vector<1x32xf32>
    %37 = vector.shape_cast %36 : vector<1x32xf32> to vector<1x1x32xf32>
    %38 = vector.broadcast %37 : vector<1x1x32xf32> to vector<1x8x32xf32>
    %39 = arith.mulf %35, %38 : vector<1x8x32xf32>
    %c0_17 = arith.constant 0 : index
    %c0_18 = arith.constant 0 : index
    %40 = vector.load %arg7[%c0_17, %c0_18] : memref<1x32xf32, #tpu.memory_space<vmem>>, vector<1x32xf32>
    %41 = vector.shape_cast %40 : vector<1x32xf32> to vector<1x1x32xf32>
    %42 = vector.broadcast %41 : vector<1x1x32xf32> to vector<1x8x32xf32>
    %43 = arith.addf %39, %42 : vector<1x8x32xf32>
    %c0_19 = arith.constant 0 : index
    %c0_20 = arith.constant 0 : index
    %c0_21 = arith.constant 0 : index
    %44 = vector.load %arg8[%c0_19, %c0_20, %c0_21] : memref<1x8x32xf32, #tpu.memory_space<vmem>>, vector<1x8x32xf32>
    tpu.vector_store %arg8[%c0_19, %c0_20, %c0_21], %43 {strides = array<i32>} : memref<1x8x32xf32, #tpu.memory_space<vmem>>, vector<1x8x32xf32>,
    return
  }
  func.func @transform_0(%arg0: i32, %arg1: i32) -> (i32, i32, i32) {
    %c0_i32 = arith.constant 0 : i32
    %c0_i32_0 = arith.constant 0 : i32
    return %arg0, %arg1, %c0_i32 : i32, i32, i32
  }
  func.func @transform_1(%arg0: i32, %arg1: i32) -> (i32, i32, i32) {
    %c0_i32 = arith.constant 0 : i32
    %c0_i32_0 = arith.constant 0 : i32
    %c0_i32_1 = arith.constant 0 : i32
    return %c0_i32, %arg1, %c0_i32_0 : i32, i32, i32
  }
  func.func @transform_2(%arg0: i32, %arg1: i32) -> (i32, i32, i32) {
    %c0_i32 = arith.constant 0 : i32
    %c0_i32_0 = arith.constant 0 : i32
    return %arg0, %arg1, %c0_i32 : i32, i32, i32
  }
  func.func @transform_3(%arg0: i32, %arg1: i32) -> (i32, i32) {
    %c0_i32 = arith.constant 0 : i32
    %c0_i32_0 = arith.constant 0 : i32
    %c0_i32_1 = arith.constant 0 : i32
    return %c0_i32, %c0_i32_0 : i32, i32
  }
  func.func @transform_4(%arg0: i32, %arg1: i32) -> (i32, i32) {
    %c0_i32 = arith.constant 0 : i32
    %c0_i32_0 = arith.constant 0 : i32
    %c0_i32_1 = arith.constant 0 : i32
    return %c0_i32, %c0_i32_0 : i32, i32
  }
  func.func @transform_5(%arg0: i32, %arg1: i32) -> (i32, i32) {
    %c0_i32 = arith.constant 0 : i32
    %c0_i32_0 = arith.constant 0 : i32
    %c0_i32_1 = arith.constant 0 : i32
    return %c0_i32, %c0_i32_0 : i32, i32
  }
  func.func @transform_6(%arg0: i32, %arg1: i32) -> (i32, i32, i32) {
    %c0_i32 = arith.constant 0 : i32
    %c0_i32_0 = arith.constant 0 : i32
    return %arg0, %arg1, %c0_i32 : i32, i32, i32
  }
}

</mosaic_0001>

<bundles_post_ra>
// kernel: tpu_custom_call.1
= control target key start
LH: loop header
LB: loop body
LE: loop exit
PB: predicated region body
PF: predicated region fallthrough
CT: control target
= control target key end

     0   :  { %11 = vsyncpa [#allocation3], 0  ;;  %s846_s0 = inlined_call_operand.vmem [shape: f32[2,8,32], index: 0, kind: input, shape index: {}]   ;;  %s847_s1 = inlined_call_operand.hbm [shape: f32[1,8,32], index: 1, kind: input, shape index: {}]   ;;  %s848_s2 = inlined_call_operand.vmem [shape: s32[2,8,1], index: 2, kind: input, shape index: {}]   ;;  %s849_s3 = inlined_call_operand.vmem [shape: f32[2,32], index: 3, kind: input, shape index: {}]   ;;  %s850_s4 = inlined_call_operand.vmem [shape: f32[1,32], index: 4, kind: input, shape index: {}]   ;;  %s851_s5 = inlined_call_operand.vmem [shape: f32[1,32], index: 5, kind: input, shape index: {}]   ;;  %s852_s6 = inlined_call_operand.hbm [shape: f32[2,8,32], index: 6, kind: output, shape index: {}]  }
   0x1   :  { %12 = vsyncpa [#allocation4], 0 }
   0x2   :  { %14 = vsyncpa [#allocation4 + $0x1], 0  ;;  %s728_s21 = smov 0   ;;  %s730_s22 = smov 0  }
   0x3   :  { %s732_s23 = smov 0   ;;  %s734_s24 = smov 0  }
   0x4   :  { %s736_s25 = smov 0   ;;  %s738_s26 = smov 0  }
   0x5 LB: > { %s489_s27 = sadd.s32 4294967295, %s689_s26   ;;  %s490_s28 = sadd.s32 4294967294, %s689_s26   ;;  %s689_s26 = sphi %s738_s26, %s20_s26   ;;  %s685_s25 = sphi %s736_s25, %s859_s25   ;;  %s681_s24 = sphi %s734_s24, %s858_s24   ;;  %s677_s23 = sphi %s732_s23, %s857_s23   ;;  %s673_s22 = sphi %s730_s22, %s856_s22   ;;  %s669_s21 = sphi %s728_s21, %s855_s21  }
   0x6   : > { %s32_s29 = sadd.s32 1, %s685_s25  ;;  %s186_s30 = sadd.s32 1, %s677_s23 }
   0x7   : > { %p34_p0 = scmp.ge.s32.totalorder %s32_s29, 2  ;;  %p196_p1 = scmp.ne.s32.totalorder %s677_s23, %s673_s22 }
   0x8   : > { %p197_p2 = scmp.eq.s32.totalorder %s489_s27, 1  ;;  %p202_p3 = scmp.ne.s32.totalorder %s673_s22, %s669_s21 }
   0x9   : > { %s861_s29 = smov (%p34_p0, %s32_s29), 0  ;;  %p203_p5 = scmp.eq.s32.totalorder %s490_s28, 1 }
   0xa   : > { %p768_p4 = por %p197_p2, %p196_p1  ;;  %s181_s8 = ssub.s32 %s685_s25, %s861_s29 }
   0xb   : > { %p491_p6 = scmp.ge.s32.totalorder %s689_s26, 1  ;;  %p184_p7 = scmp.eq.s32.totalorder %s181_s8, 0 }
   0xc   : > { %p775_p8 = por %p203_p5, %p202_p3  ;;  %p210_p9 = scmp.lt.s32.totalorder %s689_s26, 3 }
   0xd   : > { %s781_s10 = scalar_select %p184_p7, %s677_s23, %s186_s30  }
   0xe   : > { %p211_p10 = pnand %p491_p6, %p210_p9  ;;  %p517_p11 = scmp.eq.s32.totalorder %s489_s27, 0 }
   0xf   : > { %s224_s13 = sshll.u32 %s847_s1, 4  ;;  %s691_s14 = smov [#allocation2]   ;;  %s225_s13 = int_to_ptr.hbm [resolvable:$true] %s224_s13 }
  0x10   : > { %p509_p12 = pneg %p211_p10  ;;  %s226_s15 = sshll.u32 %s691_s14, 4  ;;  %s227_s15 = int_to_ptr.vmem [resolvable:$true] %s226_s15 }
  0x11   : > { %268 = sbr.rel (%p211_p10) target bundleno = 422 (0x1a6), region = 44 }
  0x12   : > { %p510_p13 = pnand %p517_p11, %p509_p12 }
  0x14   : > { %512 = dma.hbm_to_vmem [thread:$0]  (!%p510_p13), %s225_s13, 128, %s227_s15, [#allocation3]  }
  0x16   : > { %660 = dma.done.wait (%p517_p11), [#allocation3], 128  }
  0x17   : > { %662 = vsyncadd (%p517_p11), [#allocation3], 4294967168  ;;  %p308_p0 = scmp.lt.s32.totalorder %s681_s24, 1  ;;  %v692_v0 = vmov 0   ;;  %v323_v4 = vld [vmem:[#allocation2] sm:$0xff]  ;;  %vm338_vm2 = vcmask 261120  }
  0x18   : > { %570 = vset.pattern.permute.xlu0 %v692_v0  ;;  %v571_v5 = vld [vmem:[%s849_s3 + $0x1] ss:$0 sm:$0xff]  ;;  %v572_v6 = vld [vmem:[%s849_s3] ss:$0 sm:$0xff]  ;;  %s305_s14 = sand.u32 1, %s673_s22  }
  0x19   : > { %s309_s16 = scalar_select %p308_p0, %s681_s24, 1  ;;  %v573_v26 = vld [vmem:[%s850_s4] ss:$0 sm:$0xff] }
  0x1a   : > { %s496_s15 = sshll.u32 %s305_s14, 3  ;;  %v574_v28 = vld [vmem:[%s851_s5] ss:$0 sm:$0xff]  ;;  %s373_s12 = scalar_lea.sflag [#allocation4], %s305_s14 }
  0x1b   : > { %s497_s17 = sshll.u32 %s309_s16, 3  ;;  %s500_s16 = sshll.u32 %s681_s24, 3 }
  0x1c   : > { %s321_s20 = scalar_lea.vmem %s848_s2, %s497_s17  ;;  %s314_s30 = scalar_lea.vmem %s846_s0, %s497_s17 }
  0x1d   : > { %v325_v1 = vld [vmem:[%s321_s20] sm:$0xff]  ;;  %s384_s27 = scalar_lea.hbm %s852_s6, %s500_s16  ;;  %s307_s8 = scalar_lea.vmem [#allocation5], %s496_s15 }
  0x1e   : > { %vm327_vm0 = vcmp.eq.s32.totalorder %v325_v1, 1  ;;  %v322_v3 = vld [vmem:[%s314_s30] sm:$0xff]  ;;  %s386_s24 = sshll.u32 %s307_s8, 4  ;;  %s388_s11 = sshll.u32 %s384_s27, 4  ;;  %s387_s24 = int_to_ptr.vmem [resolvable:$true] %s386_s24  ;;  %s389_s11 = int_to_ptr.hbm [resolvable:$true] %s388_s11 }
  0x1f   : > { %v329_v2 = vsel %vm327_vm0, 1, %v692_v0  ;;  %v324_v7 = vadd.f32 %v323_v4, %v322_v3  ;;  %s621_s13 = sshra.s32 %s389_s11, 4  ;;  %s627_s15 = scalar_lea.hbm %s852_s6, 16  ;;  %s622_s13 = int_to_ptr.hbm [resolvable:$true] %s621_s13 }
  0x20   : > { %331 = vperm.xlu0 %570, %v329_v2   ;;  %s623_s16 = scalar_lea.hbm %s622_s13, 8  ;;  %p628_p5 = scmp.lt.s32.totalorder %s622_s13, %s852_s6 }
  0x21   : > { %p624_p1 = scmp.ne.s32.totalorder %s622_s13, %s623_s16  ;;  %p629_p6 = scmp.lt.s32.totalorder %s627_s15, %s623_s16 }
  0x23   : > { %p625_p2 = pnand %p624_p1, %p768_p4  ;;  %p630_p7 = por %p629_p6, %p628_p5 }
  0x25   : > { %p626_p3 = pneg %p625_p2 }
  0x27   : > { %p631_p9 = pnand %p630_p7, %p626_p3 }
  0x92   : > { %v332_v8 = vpop.permute.xlu0 %331 }
  0x93   : > { %vm333_vm1 = vcmp.eq.s32.totalorder %v332_v8, 1 }
  0x94   : > { %v336_v9 = vsel %vm333_vm1, %v571_v5, %v572_v6 }
  0x95   : > { %v337_v10 = vadd.f32 %v336_v9, %v324_v7 }
  0x97   : > { %v339_v11 = vsel %vm338_vm2, %v337_v10, 0.0 }
  0x98   : > { %340 = vadd.xlane.f32.xlu0 %v339_v11 }
 0x10b   : > { %v341_v12 = vpop.xlane.xlu0 %340 }
 0x10c   : > { %v342_v13 = vmul.f32 0.03125, %v341_v12 }
 0x10e   : > { %v343_v14 = vsub.f32 %v337_v10, %v342_v13 }
 0x110   : > { %v344_v15 = vmul.f32 %v343_v14, %v343_v14 }
 0x112   : > { %v345_v16 = vsel %vm338_vm2, %v344_v15, 0.0 }
 0x113   : > { %346 = vadd.xlane.f32.xlu1 %v345_v16 }
 0x186   : > { %v347_v17 = vpop.xlane.xlu1 %346 }
 0x187   : > { %v348_v18 = vmul.f32 0.03125, %v347_v17 }
 0x189   : > { %v349_v19 = vadd.f32 1e-05, %v348_v18 }
 0x18b   : > { %575 = vrsqrt.f32 %v349_v19  ;;  %vm356_vm4 = vweird.f32 %v349_v19 }
 0x191   : > { %v576_v20 = vpop.eup %575 }
 0x192   : > { %v351_v21 = vmul.f32 %v576_v20, %v349_v19  ;;  %vm357_vm3 = vweird.f32 %v576_v20 }
 0x193   : > { %vm358_vm5 = vmor %vm356_vm4, %vm357_vm3 }
 0x194   : > { %v352_v22 = vmul.f32 %v576_v20, %v351_v21 }
 0x196   : > { %v353_v23 = vmul.f32 0.5, %v352_v22 }
 0x198   : > { %v354_v24 = vsub.f32 1.5, %v353_v23 }
 0x19a   : > { %v355_v25 = vmul.f32 %v576_v20, %v354_v24 }
 0x19c   : > { %v359_v27 = vsel %vm358_vm5, %v576_v20, %v355_v25 }
 0x19d   : > { %v360_v29 = vmul.f32 %v359_v27, %v343_v14 }
 0x19f   : > { %v365_v30 = vmul.f32 %v573_v26, %v360_v29 }
 0x1a1   : > { %v370_v31 = vadd.f32 %v574_v28, %v365_v30 }
 0x1a3   : > { %371 = vst.msk [vmem:[%s307_s8] sm:$0xff] %vm338_vm2, %v370_v31 }
 0x1a4   : > { %634 = shalt.err (!%p631_p9)
}
 0x1a5   : > { %507 = dma.vmem_to_hbm [thread:$0]  (%p768_p4), %s387_s24, 128, %s389_s11, %s373_s12  }
 0x1a6 PF: > { %p519_p10 = scmp.ge.s32.totalorder %s689_s26, 2  ;;  %s400_s14 = sand.u32 1, %s669_s21  }
 0x1a7   : > { %s401_s27 = scalar_lea.sflag [#allocation4], %s400_s14 }
 0x1a8   : > { %p514_p11 = pnand %p519_p10, %p775_p8 }
 0x1aa   : > { %p515_p12 = pneg %p514_p11 }
 0x1ac   : > { %664 = dma.done.wait (%p515_p12), %s401_s27, 128  }
 0x1ad   : > { %666 = vsyncadd (%p515_p12), %s401_s27, 4294967168  ;;  %s20_s26 = sadd.s32 1, %s689_s26   ;;  %s855_s21 = smov %s673_s22 }
 0x1ae   : > { %p17_p13 = scmp.ge.s32.totalorder %s20_s26, 4   ;;  %s856_s22 = smov %s677_s23 }
 0x1af   : > { %s857_s23 = smov %s781_s10  ;;  %s858_s24 = smov %s685_s25 }
 0x1b0   : > { %s859_s25 = smov %s861_s29  ;;  %19 = sbr.rel (!%p17_p13) target bundleno = 5 (0x5), region = 88 }
 0x1b5   :  { %407 = vsyncpa [#allocation3], 1 }
 0x1b6   :  { %409 = vsyncpa [#allocation3 + $0x1], 1 }
 0x1b7   :  { %410 = vsyncpa [#allocation4], 1 }
 0x1b8   :  { %412 = vsyncpa [#allocation4 + $0x1], 1 }

</bundles_post_ra>
